<compile_context>
chip_gen: v5e
topology: v5e:2x2
jax: 0.10.0
libtpu: 0.0.40
codegen_flags: <defaults>
</compile_context>

<pallas_src>
import functools
import numpy as np
import jax
import jax.numpy as jnp
from jax import lax
from jax.experimental import pallas as pl
from jax.experimental.pallas import tpu as pltpu


_OUT_LANES = 128  # lane-dense output slab width


def _align8(x):
    return ((x + 7) // 8) * 8


def _slab_layout(node_num, w):
    """Row offsets of each folded/padded weight block inside the packed slab."""
    offs = {}
    r = 0

    def add(name, rows):
        nonlocal r
        offs[name] = r
        r += _align8(rows)

    add("fw1", node_num)   # features @ w_enc1                (node_num, w)
    add("w2", w)           # w_enc2  (zero-padded)            (w, w)
    add("w3", w)           # w_enc3  (zero-padded)            (w, w)
    add("d1w", w)          # dec1 weight^T (rows/cols padded) (w, w)
    add("d1b", 1)          # dec1 bias                        (1, w)
    add("d2w", w)          # dec2 weight^T (cols padded)      (w, w)
    add("d2b", 1)          # dec2 bias (padded)               (1, w)
    add("dmf", w)          # dec2_wT @ Mfold (padded)         (w, w)
    add("dmb", 1)          # dec2_b  @ Mfold (padded)         (1, w)
    return offs, r


def prepare_params(params, node_num, layer1_dim, layer2_dim, dec1_dim, dec2_dim):
    """One-time host-side folding + packing of all weights into a single slab."""
    w = max(layer1_dim, layer2_dim, dec1_dim, dec2_dim)

    feats = np.asarray(params["features"], np.float32)
    w1 = np.asarray(params["w_enc1"], np.float32)
    fw1 = feats @ w1                                                  # (node_num, l1)
    mfold = (np.asarray(params["mapping1"], np.float32)
             @ np.asarray(params["mapping2"], np.float32).T)          # (d2, d2)
    d2w = np.asarray(params["dec2_wT"], np.float32)
    d2b = np.asarray(params["dec2_b"], np.float32)

    def pad(a, rows, cols):
        a = np.asarray(a, np.float32)
        out = np.zeros((rows, cols), np.float32)
        out[:a.shape[0], :a.shape[1]] = a
        return out

    offs, total = _slab_layout(node_num, w)
    slab = np.zeros((total, w), np.float32)

    def put(name, a, rows):
        slab[offs[name]:offs[name] + rows, :] = pad(a, rows, w)

    put("fw1", fw1, node_num)
    put("w2", params["w_enc2"], w)
    put("w3", params["w_enc3"], w)
    put("d1w", params["dec1_wT"], w)
    put("d1b", params["dec1_b"], 1)
    put("d2w", d2w, w)
    put("d2b", d2b, 1)
    put("dmf", d2w @ mfold, w)
    put("dmb", d2b @ mfold, 1)
    return {"wslab": jnp.asarray(slab)}


# ----------------------------------------------------------------------------
# Fused Pallas kernel: encode -> reparameterize -> decode -> adjacency
# ----------------------------------------------------------------------------
@jax.jit
def graphgen_device(m1, m2, eps, wslab):
    n = m2.shape[0]
    node_num = m1.shape[1]
    l2 = eps.shape[1]
    w = wslab.shape[1]
    offs, _ = _slab_layout(node_num, w)
    assert 2 * w + n <= _OUT_LANES

    # Pad eps to the common lane width (padding lanes stay exactly zero
    # through the whole pipeline: relu(0)=0, 0*exp(0)+0=0, zero weight rows).
    eps_p = jnp.pad(eps, ((0, 0), (0, w - l2)))

    def kernel(m1_ref, m2_ref, eps_ref, w_ref, out_ref):
        def blk(name, rows):
            r0 = offs[name]
            return w_ref[r0:r0 + rows, :]          # static row slice: free view

        # encoder layer 1 : e1 = relu(m1 @ (features @ W1))
        e1 = jnp.maximum(
            jnp.dot(m1_ref[...], blk("fw1", node_num),
                    preferred_element_type=jnp.float32), 0.0)

        # encoder layers 2/3 : shared aggregation, two tiny matmuls
        agg2 = jnp.dot(m2_ref[...], e1, preferred_element_type=jnp.float32)
        mu = jnp.maximum(
            jnp.dot(agg2, blk("w2", w), preferred_element_type=jnp.float32), 0.0)
        lv = jnp.maximum(
            jnp.dot(agg2, blk("w3", w), preferred_element_type=jnp.float32), 0.0)

        # reparameterize : h = eps * exp(logvar) + mu   (std = exp(logvar),
        # matching the original PyTorch GraphGen.reparameterize)
        h = eps_ref[...] * jnp.exp(lv) + mu

        # decode : o1 = tanh(h @ D1 + b1) ; o = o1 @ D2 + b2 ; t = o1 @ (D2 Mfold) + b2 Mfold
        o1 = jnp.tanh(
            jnp.dot(h, blk("d1w", w), preferred_element_type=jnp.float32)
            + blk("d1b", 1))
        o = (jnp.dot(o1, blk("d2w", w), preferred_element_type=jnp.float32)
             + blk("d2b", 1))
        t = (jnp.dot(o1, blk("dmf", w), preferred_element_type=jnp.float32)
             + blk("dmb", 1))

        # adjacency : adj = (o @ M1) @ (o @ M2).T == t @ o.T
        adj = lax.dot_general(t, o, (((1,), (1,)), ((), ())),
                              preferred_element_type=jnp.float32)

        # single lane-dense (N, 128) output slab: [ mu | logvar | adj | 0-pad ]
        out_ref[...] = jnp.zeros_like(out_ref)
        out_ref[:, 0:w] = mu
        out_ref[:, w:2 * w] = lv
        out_ref[:, 2 * w:2 * w + n] = adj

    full = lambda s: pl.BlockSpec(s, lambda i: (0, 0))
    out = pl.pallas_call(
        kernel,
        out_shape=jax.ShapeDtypeStruct((n, _OUT_LANES), jnp.float32),
        grid=(1,),
        in_specs=[full(m1.shape), full(m2.shape),
                  full(eps_p.shape), full(wslab.shape)],
        out_specs=full((n, _OUT_LANES)),
        compiler_params=pltpu.CompilerParams(
            dimension_semantics=("arbitrary",)),
    )(m1, m2, eps_p, wslab)

    mu = out[:, 0:l2]
    logvar = out[:, w:w + l2]
    adj = out[:, 2 * w:2 * w + n]
    return mu, logvar, adj


# ----------------------------------------------------------------------------
# Host-side glue: graph, neighbor sampling, aggregation masks (pure Python)
# ----------------------------------------------------------------------------
def build_masks(nodes, adj_lists, samp_num, node_num):
    # TODO(synk): random.sample replaced by a deterministic "first-k of sorted
    # neighbors" so the script is reproducible; mean-aggregation math is identical.
    def sample(neighs):
        s = sorted(neighs)
        return s[:samp_num] if len(s) >= samp_num else s

    to_neighs = [adj_lists[int(n)] for n in nodes]
    samp_neighs = [set(sample(tn)) for tn in to_neighs]
    unique_nodes_list = sorted(set.union(*samp_neighs) | set(int(n) for n in nodes))
    feature_dict = {v: i for i, v in enumerate(unique_nodes_list)}

    # enc1 mask: for each unique node, mean over its own sampled graph neighbors.
    u = len(unique_nodes_list)
    m1 = np.zeros((u, node_num), np.float32)
    for i, un in enumerate(unique_nodes_list):
        sn = sample(adj_lists[un])
        for v in sn:
            m1[i, v] = 1.0
        m1[i] /= max(len(sn), 1)

    # enc2/enc3 mask: for each query node, mean over its sampled neighbors'
    # layer-1 embeddings (indexed inside the unique-node table).
    n = len(nodes)
    m2 = np.zeros((n, u), np.float32)
    for i, sn in enumerate(samp_neighs):
        for v in sn:
            m2[i, feature_dict[v]] = 1.0
        m2[i] /= max(len(sn), 1)

    return jnp.asarray(m1), jnp.asarray(m2)


def graphgen_forward(nodes, adj_lists, prepared, samp_num, node_num, eps):
    m1, m2 = build_masks(nodes, adj_lists, samp_num, node_num)
    mu, logvar, adj = graphgen_device(m1, m2, eps, prepared["wslab"])
    return mu, logvar, adj, None, None


# ----------------------------------------------------------------------------
# Pure-JAX reference (un-fused, un-folded) for a correctness check
# ----------------------------------------------------------------------------
def reference_forward(nodes, adj_lists, params, samp_num, node_num, eps):
    m1, m2 = build_masks(nodes, adj_lists, samp_num, node_num)
    e1 = jnp.maximum((m1 @ params["features"]) @ params["w_enc1"], 0.0)
    mu = jnp.maximum((m2 @ e1) @ params["w_enc2"], 0.0)
    logvar = jnp.maximum((m2 @ e1) @ params["w_enc3"], 0.0)
    h = eps * jnp.exp(logvar) + mu
    o = jnp.tanh(h @ params["dec1_wT"] + params["dec1_b"])
    o = o @ params["dec2_wT"] + params["dec2_b"]
    emb1 = o @ params["mapping1"]
    emb2 = o @ params["mapping2"]
    return mu, logvar, emb1 @ emb2.T


# ----------------------------------------------------------------------------
# Main
# ----------------------------------------------------------------------------
if __name__ == "__main__":
    # Model hyper-parameters (small, consistent with module __init__).
    node_num, feature_dim = 32, 32
    layer1_dim, layer2_dim = 32, 16
    dec1_dim, dec2_dim = 32, 16
    samp_num = 4

    # Deterministic ring-ish graph: each node connected to i±1, i±2 (mod node_num).
    adj_lists = {
        i: {(i - 2) % node_num, (i - 1) % node_num,
            (i + 1) % node_num, (i + 2) % node_num}
        for i in range(node_num)
    }
    nodes = [0, 3, 5, 8, 13, 21, 26, 31]  # batch of query nodes (N = 8)

    # Deterministic parameter init.
    key = jax.random.PRNGKey(0)
    ks = jax.random.split(key, 12)
    xavier = float(np.sqrt(2.0 / (dec2_dim + dec2_dim)))
    params = {
        "features": jax.random.normal(ks[0], (node_num, feature_dim), jnp.float32),
        "w_enc1": jax.random.normal(ks[1], (feature_dim, layer1_dim), jnp.float32) * 0.1,
        "w_enc2": jax.random.normal(ks[2], (layer1_dim, layer2_dim), jnp.float32) * 0.1,
        "w_enc3": jax.random.normal(ks[3], (layer1_dim, layer2_dim), jnp.float32) * 0.1,
        # nn.Linear weights are (out, in); store pre-transposed (in, out).
        "dec1_wT": jax.random.normal(ks[4], (layer2_dim, dec1_dim), jnp.float32) * 0.1,
        "dec1_b": jax.random.normal(ks[5], (1, dec1_dim), jnp.float32) * 0.1,
        "dec2_wT": jax.random.normal(ks[6], (dec1_dim, dec2_dim), jnp.float32) * 0.1,
        "dec2_b": jax.random.normal(ks[7], (1, dec2_dim), jnp.float32) * 0.1,
        "mapping1": jax.random.normal(ks[8], (dec2_dim, dec2_dim), jnp.float32) * xavier,
        "mapping2": jax.random.normal(ks[9], (dec2_dim, dec2_dim), jnp.float32) * xavier,
    }
    eps = jax.random.normal(ks[10], (len(nodes), layer2_dim), jnp.float32)

    # One-time host-side folding + packing (out of the per-call path).
    prepared = prepare_params(params, node_num, layer1_dim, layer2_dim,
                              dec1_dim, dec2_dim)

    mu, logvar, adj, _, _ = graphgen_forward(
        nodes, adj_lists, prepared, samp_num, node_num, eps)
    jax.block_until_ready((mu, logvar, adj))

    mu_r, logvar_r, adj_r = reference_forward(
        nodes, adj_lists, params, samp_num, node_num, eps)
    np.testing.assert_allclose(np.asarray(mu), np.asarray(mu_r), atol=1e-4, rtol=1e-4)
    np.testing.assert_allclose(np.asarray(logvar), np.asarray(logvar_r), atol=1e-4, rtol=1e-4)
    np.testing.assert_allclose(np.asarray(adj), np.asarray(adj_r), atol=1e-3, rtol=1e-3)

    print("KERNEL_OK")
</pallas_src>

<mosaic_0001>
module attributes {stable_mosaic.version = 11 : i64} {
  func.func @kernel(%arg0: i32, %arg1: memref<29x32xf32, #tpu.memory_space<vmem>>, %arg2: memref<8x29xf32, #tpu.memory_space<vmem>>, %arg3: memref<8x32xf32, #tpu.memory_space<vmem>>, %arg4: memref<216x32xf32, #tpu.memory_space<vmem>>, %arg5: memref<8x128xf32, #tpu.memory_space<vmem>>) attributes {dimension_semantics = [#tpu.dimension_semantics<arbitrary>], iteration_bounds = array<i64: 1>, scalar_prefetch = 0 : i64, scratch_operands = 0 : i64, tpu.core_type = #tpu.core_type<tc>, window_params = [{pipeline_mode = #tpu.pipeline_mode<synchronous>, transform_indices = @transform_0, window_bounds = array<i64: 29, 32>}, {pipeline_mode = #tpu.pipeline_mode<synchronous>, transform_indices = @transform_1, window_bounds = array<i64: 8, 29>}, {pipeline_mode = #tpu.pipeline_mode<synchronous>, transform_indices = @transform_2, window_bounds = array<i64: 8, 32>}, {pipeline_mode = #tpu.pipeline_mode<synchronous>, transform_indices = @transform_3, window_bounds = array<i64: 216, 32>}, {pipeline_mode = #tpu.pipeline_mode<synchronous>, transform_indices = @transform_4, window_bounds = array<i64: 8, 128>}]} {
    %c0 = arith.constant 0 : index
    %c0_0 = arith.constant 0 : index
    %0 = vector.load %arg1[%c0, %c0_0] : memref<29x32xf32, #tpu.memory_space<vmem>>, vector<29x32xf32>
    %c0_1 = arith.constant 0 : index
    %c0_2 = arith.constant 0 : index
    %1 = vector.load %arg4[%c0_1, %c0_2] : memref<216x32xf32, #tpu.memory_space<vmem>>, vector<32x32xf32>
    %cst = arith.constant dense<0.000000e+00> : vector<29x32xf32>
    %2 = tpu.matmul %0, %1, %cst {dimension_numbers = #tpu.dot_dimension_numbers<[1], [0], [0], [1], [0, 0, 1, 1], [], []>} : vector<29x32xf32>, vector<32x32xf32>, vector<29x32xf32> -> vector<29x32xf32>
    %cst_3 = arith.constant 0.000000e+00 : f32
    %3 = vector.broadcast %cst_3 : f32 to vector<29x32xf32>
    %4 = arith.maximumf %2, %3 : vector<29x32xf32>
    %c0_4 = arith.constant 0 : index
    %c0_5 = arith.constant 0 : index
    %5 = vector.load %arg2[%c0_4, %c0_5] : memref<8x29xf32, #tpu.memory_space<vmem>>, vector<8x29xf32>
    %cst_6 = arith.constant dense<0.000000e+00> : vector<8x32xf32>
    %6 = tpu.matmul %5, %4, %cst_6 {dimension_numbers = #tpu.dot_dimension_numbers<[1], [0], [0], [1], [0, 0, 1, 1], [], []>} : vector<8x29xf32>, vector<29x32xf32>, vector<8x32xf32> -> vector<8x32xf32>
    %c32 = arith.constant 32 : index
    %c0_7 = arith.constant 0 : index
    %7 = vector.load %arg4[%c32, %c0_7] : memref<216x32xf32, #tpu.memory_space<vmem>>, vector<32x32xf32>
    %cst_8 = arith.constant dense<0.000000e+00> : vector<8x32xf32>
    %8 = tpu.matmul %6, %7, %cst_8 {dimension_numbers = #tpu.dot_dimension_numbers<[1], [0], [0], [1], [0, 0, 1, 1], [], []>} : vector<8x32xf32>, vector<32x32xf32>, vector<8x32xf32> -> vector<8x32xf32>
    %cst_9 = arith.constant 0.000000e+00 : f32
    %9 = vector.broadcast %cst_9 : f32 to vector<8x32xf32>
    %10 = arith.maximumf %8, %9 : vector<8x32xf32>
    %c64 = arith.constant 64 : index
    %c0_10 = arith.constant 0 : index
    %11 = vector.load %arg4[%c64, %c0_10] : memref<216x32xf32, #tpu.memory_space<vmem>>, vector<32x32xf32>
    %cst_11 = arith.constant dense<0.000000e+00> : vector<8x32xf32>
    %12 = tpu.matmul %6, %11, %cst_11 {dimension_numbers = #tpu.dot_dimension_numbers<[1], [0], [0], [1], [0, 0, 1, 1], [], []>} : vector<8x32xf32>, vector<32x32xf32>, vector<8x32xf32> -> vector<8x32xf32>
    %cst_12 = arith.constant 0.000000e+00 : f32
    %13 = vector.broadcast %cst_12 : f32 to vector<8x32xf32>
    %14 = arith.maximumf %12, %13 : vector<8x32xf32>
    %c0_13 = arith.constant 0 : index
    %c0_14 = arith.constant 0 : index
    %15 = vector.load %arg3[%c0_13, %c0_14] : memref<8x32xf32, #tpu.memory_space<vmem>>, vector<8x32xf32>
    %16 = math.exp %14 : vector<8x32xf32>
    %17 = arith.mulf %15, %16 : vector<8x32xf32>
    %18 = arith.addf %17, %10 : vector<8x32xf32>
    %c96 = arith.constant 96 : index
    %c0_15 = arith.constant 0 : index
    %19 = vector.load %arg4[%c96, %c0_15] : memref<216x32xf32, #tpu.memory_space<vmem>>, vector<32x32xf32>
    %cst_16 = arith.constant dense<0.000000e+00> : vector<8x32xf32>
    %20 = tpu.matmul %18, %19, %cst_16 {dimension_numbers = #tpu.dot_dimension_numbers<[1], [0], [0], [1], [0, 0, 1, 1], [], []>} : vector<8x32xf32>, vector<32x32xf32>, vector<8x32xf32> -> vector<8x32xf32>
    %c128 = arith.constant 128 : index
    %c0_17 = arith.constant 0 : index
    %21 = vector.load %arg4[%c128, %c0_17] : memref<216x32xf32, #tpu.memory_space<vmem>>, vector<1x32xf32>
    %22 = vector.broadcast %21 : vector<1x32xf32> to vector<8x32xf32>
    %23 = arith.addf %20, %22 : vector<8x32xf32>
    %24 = math.tanh %23 : vector<8x32xf32>
    %c136 = arith.constant 136 : index
    %c0_18 = arith.constant 0 : index
    %25 = vector.load %arg4[%c136, %c0_18] : memref<216x32xf32, #tpu.memory_space<vmem>>, vector<32x32xf32>
    %cst_19 = arith.constant dense<0.000000e+00> : vector<8x32xf32>
    %26 = tpu.matmul %24, %25, %cst_19 {dimension_numbers = #tpu.dot_dimension_numbers<[1], [0], [0], [1], [0, 0, 1, 1], [], []>} : vector<8x32xf32>, vector<32x32xf32>, vector<8x32xf32> -> vector<8x32xf32>
    %c168 = arith.constant 168 : index
    %c0_20 = arith.constant 0 : index
    %27 = vector.load %arg4[%c168, %c0_20] : memref<216x32xf32, #tpu.memory_space<vmem>>, vector<1x32xf32>
    %28 = vector.broadcast %27 : vector<1x32xf32> to vector<8x32xf32>
    %29 = arith.addf %26, %28 : vector<8x32xf32>
    %c176 = arith.constant 176 : index
    %c0_21 = arith.constant 0 : index
    %30 = vector.load %arg4[%c176, %c0_21] : memref<216x32xf32, #tpu.memory_space<vmem>>, vector<32x32xf32>
    %cst_22 = arith.constant dense<0.000000e+00> : vector<8x32xf32>
    %31 = tpu.matmul %24, %30, %cst_22 {dimension_numbers = #tpu.dot_dimension_numbers<[1], [0], [0], [1], [0, 0, 1, 1], [], []>} : vector<8x32xf32>, vector<32x32xf32>, vector<8x32xf32> -> vector<8x32xf32>
    %c208 = arith.constant 208 : index
    %c0_23 = arith.constant 0 : index
    %32 = vector.load %arg4[%c208, %c0_23] : memref<216x32xf32, #tpu.memory_space<vmem>>, vector<1x32xf32>
    %33 = vector.broadcast %32 : vector<1x32xf32> to vector<8x32xf32>
    %34 = arith.addf %31, %33 : vector<8x32xf32>
    %cst_24 = arith.constant dense<0.000000e+00> : vector<8x8xf32>
    %35 = tpu.matmul %34, %29, %cst_24 {dimension_numbers = #tpu.dot_dimension_numbers<[1], [1], [0], [0], [0, 0, 1, 0], [], []>} : vector<8x32xf32>, vector<8x32xf32>, vector<8x8xf32> -> vector<8x8xf32>
    %cst_25 = arith.constant 0.000000e+00 : f32
    %36 = vector.broadcast %cst_25 : f32 to vector<8x128xf32>
    %c0_26 = arith.constant 0 : index
    %c0_27 = arith.constant 0 : index
    %37 = vector.load %arg5[%c0_26, %c0_27] : memref<8x128xf32, #tpu.memory_space<vmem>>, vector<8x128xf32>
    tpu.vector_store %arg5[%c0_26, %c0_27], %36 {strides = array<i32>} : memref<8x128xf32, #tpu.memory_space<vmem>>, vector<8x128xf32>,
    %c0_28 = arith.constant 0 : index
    %c0_29 = arith.constant 0 : index
    %38 = vector.load %arg5[%c0_28, %c0_29] : memref<8x128xf32, #tpu.memory_space<vmem>>, vector<8x32xf32>
    tpu.vector_store %arg5[%c0_28, %c0_29], %10 {strides = array<i32>} : memref<8x128xf32, #tpu.memory_space<vmem>>, vector<8x32xf32>,
    %c0_30 = arith.constant 0 : index
    %c32_31 = arith.constant 32 : index
    %39 = vector.load %arg5[%c0_30, %c32_31] : memref<8x128xf32, #tpu.memory_space<vmem>>, vector<8x32xf32>
    tpu.vector_store %arg5[%c0_30, %c32_31], %14 {strides = array<i32>} : memref<8x128xf32, #tpu.memory_space<vmem>>, vector<8x32xf32>,
    %c0_32 = arith.constant 0 : index
    %c64_33 = arith.constant 64 : index
    %40 = vector.load %arg5[%c0_32, %c64_33] : memref<8x128xf32, #tpu.memory_space<vmem>>, vector<8x8xf32>
    tpu.vector_store %arg5[%c0_32, %c64_33], %35 {strides = array<i32>} : memref<8x128xf32, #tpu.memory_space<vmem>>, vector<8x8xf32>,
    return
  }
  func.func @transform_0(%arg0: i32) -> (i32, i32) {
    %c0_i32 = arith.constant 0 : i32
    %c0_i32_0 = arith.constant 0 : i32
    %c0_i32_1 = arith.constant 0 : i32
    return %c0_i32, %c0_i32_0 : i32, i32
  }
  func.func @transform_1(%arg0: i32) -> (i32, i32) {
    %c0_i32 = arith.constant 0 : i32
    %c0_i32_0 = arith.constant 0 : i32
    %c0_i32_1 = arith.constant 0 : i32
    return %c0_i32, %c0_i32_0 : i32, i32
  }
  func.func @transform_2(%arg0: i32) -> (i32, i32) {
    %c0_i32 = arith.constant 0 : i32
    %c0_i32_0 = arith.constant 0 : i32
    %c0_i32_1 = arith.constant 0 : i32
    return %c0_i32, %c0_i32_0 : i32, i32
  }
  func.func @transform_3(%arg0: i32) -> (i32, i32) {
    %c0_i32 = arith.constant 0 : i32
    %c0_i32_0 = arith.constant 0 : i32
    %c0_i32_1 = arith.constant 0 : i32
    return %c0_i32, %c0_i32_0 : i32, i32
  }
  func.func @transform_4(%arg0: i32) -> (i32, i32) {
    %c0_i32 = arith.constant 0 : i32
    %c0_i32_0 = arith.constant 0 : i32
    %c0_i32_1 = arith.constant 0 : i32
    return %c0_i32, %c0_i32_0 : i32, i32
  }
}

</mosaic_0001>

<bundles_post_ra>
// kernel: graphgen_device.1
= control target key start
LH: loop header
LB: loop body
LE: loop exit
PB: predicated region body
PF: predicated region fallthrough
CT: control target
= control target key end

     0   :  { %vm25_vm0 = vcmask 261120   ;;  %vm76_vm1 = vcmask 1044480   ;;  %vm72_vm2 = vcmask 236544   ;;  %v314_v26 = vmov 0.0   ;;  %s315_s5 = smov 32   ;;  %s465_s3 = inlined_call_operand.vmem [shape: f32[216,32], index: 3, kind: input, shape index: {}]   ;;  %s466_s0 = inlined_call_operand.vmem [shape: f32[29,32], index: 0, kind: input, shape index: {}]   ;;  %s467_s1 = inlined_call_operand.vmem [shape: f32[8,29], index: 1, kind: input, shape index: {}]   ;;  %s468_s4 = inlined_call_operand.vmem [shape: f32[8,128], index: 4, kind: output, shape index: {}]   ;;  %s469_s2 = inlined_call_operand.vmem [shape: f32[8,32], index: 2, kind: input, shape index: {}]  }
   0x1   :  { %v24_v0 = vld [vmem:[%s465_s3 + $0x18] sm:$0xff]  ;;  %v23_v1 = vld [vmem:[%s465_s3 + $0x10] sm:$0xff]  ;;  %v22_v2 = vld [vmem:[%s465_s3 + $0x8] sm:$0xff]  ;;  %269 = vst [vmem:[%s468_s4] sm:$0xff] %v314_v26  ;;  %vm275_vm3 = vcmask 523520   ;;  %vm281_vm4 = vcmask 589312  }
   0x2   :  { %50 = vmatpush.msra.mxu0 %v24_v0  ;;  %300 = vmatpush.msra.mxu2 %v24_v0  ;;  %v21_v3 = vld [vmem:[%s465_s3] sm:$0xff]  ;;  %v20_v5 = vld [vmem:[%s466_s0 + $0x18] sm:$0x1f]  ;;  %v18_v6 = vld [vmem:[%s466_s0 + $0x8] sm:$0xff] }
   0x3   :  { %v17_v4 = vld [vmem:[%s466_s0] sm:$0xff]  ;;  %v19_v7 = vld [vmem:[%s466_s0 + $0x10] sm:$0xff]  ;;  %v103_v8 = vld [vmem:[%s465_s3 + $0x38] sm:$0xff] }
   0x4   :  { %51 = vmatpush.msra.mxu0 %v23_v1  ;;  %301 = vmatpush.msra.mxu2 %v23_v1  ;;  %v131_v9 = vld [vmem:[%s465_s3 + $0x58] sm:$0xff]  ;;  %v102_v10 = vld [vmem:[%s465_s3 + $0x30] sm:$0xff]  ;;  %v101_v12 = vld [vmem:[%s465_s3 + $0x28] sm:$0xff] }
   0x5   :  { %144 = vmatpush.msra.mxu3 %v131_v9  ;;  %v130_v11 = vld [vmem:[%s465_s3 + $0x50] sm:$0xff]  ;;  %v129_v13 = vld [vmem:[%s465_s3 + $0x48] sm:$0xff]  ;;  %v71_v22 = vld [vmem:[%s467_s1] sm:$0xff] }
   0x6   :  { %52 = vmatpush.msra.mxu0 %v22_v2  ;;  %302 = vmatpush.msra.mxu2 %v22_v2  ;;  %v100_v23 = vld [vmem:[%s465_s3 + $0x20] sm:$0xff]  ;;  %v161_v27 = vld [vmem:[%s465_s3 + $0x78] sm:$0xff]  ;;  %v160_v28 = vld [vmem:[%s465_s3 + $0x70] sm:$0xff] }
   0x7   :  { %145 = vmatpush.msra.mxu3 %v130_v11  ;;  %v128_v24 = vld [vmem:[%s465_s3 + $0x40] sm:$0xff]  ;;  %v159_v29 = vld [vmem:[%s465_s3 + $0x68] sm:$0xff]  ;;  %v190_v42 = vld [vmem:[%s465_s3 + $0x98] sm:$0xff] }
   0x8   :  { %53 = vmatpush.msra.mxu0 %v21_v3  ;;  %303 = vmatpush.msra.mxu2 %v21_v3  ;;  %v158_v30 = vld [vmem:[%s465_s3 + $0x60] sm:$0xff]  ;;  %v220_v41 = vld [vmem:[%s465_s3 + $0xc8] sm:$0xff]  ;;  %v189_v44 = vld [vmem:[%s465_s3 + $0x90] sm:$0xff] }
   0x9   :  { %287 = vmatmul.msk.f32.vlgmr.msra.gmra.mxu0 %vm25_vm0, %v17_v4  ;;  %290 = vmatmul.msk.f32.vlgmr.msra.gmra.mxu2 %vm25_vm0, %v20_v5  ;;  %v153_v36 = vld [vmem:[%s469_s2] sm:$0xff]  ;;  %v218_v45 = vld [vmem:[%s465_s3 + $0xb8] sm:$0xff]  ;;  %v188_v46 = vld [vmem:[%s465_s3 + $0x88] sm:$0xff] }
   0xa   :  { %119 = vmatpush.msrb.mxu2 %v103_v8  ;;  %146 = vmatpush.msra.mxu3 %v129_v13  ;;  %v191_v40 = vld [vmem:[%s465_s3 + $0xa0] sm:$0xff]  ;;  %v217_v47 = vld [vmem:[%s465_s3 + $0xb0] sm:$0xff]  ;;  %v308_v53 = vld [vmem:[%s465_s3 + $0xa8] ss:$0 sm:$0xff] }
   0xb   :  { %v219_v43 = vld [vmem:[%s465_s3 + $0xc0] sm:$0xff]  ;;  %v309_v55 = vld [vmem:[%s465_s3 + $0xd0] ss:$0 sm:$0xff] }
   0xc   :  { %120 = vmatpush.msrb.mxu2 %v102_v10  ;;  %147 = vmatpush.msra.mxu3 %v128_v24  ;;  %v307_v49 = vld [vmem:[%s465_s3 + $0x80] ss:$0 sm:$0xff] }
   0xe   :  { %121 = vmatpush.msrb.mxu2 %v101_v12  ;;  %235 = vmatpush.msrb.mxu3 %v220_v41 }
  0x10   :  { %122 = vmatpush.msrb.mxu2 %v100_v23  ;;  %236 = vmatpush.msrb.mxu3 %v219_v43 }
  0x11   :  { %288 = vmatmul.msk.f32.gmra.mxu0 %vm25_vm0, %v18_v6 }
  0x12   :  { %209 = vmatpush.msra.mxu2 %v191_v40  ;;  %237 = vmatpush.msrb.mxu3 %v218_v45 }
  0x14   :  { %210 = vmatpush.msra.mxu2 %v190_v42  ;;  %238 = vmatpush.msrb.mxu3 %v217_v47 }
  0x16   :  { %211 = vmatpush.msra.mxu2 %v189_v44 }
  0x18   :  { %212 = vmatpush.msra.mxu2 %v188_v46 }
  0x19   :  { %289 = vmatmul.msk.f32.gmra.mxu0 %vm25_vm0, %v19_v7 }
  0x86   :  { %v55_v14 = vpop.f32.mrf.mxu0 }
  0x87   :  { %v67_v21 = vmax.f32 %v55_v14, 0.0 }
  0x8c   :  { %v64_v15 = vpop.f32.mrf.mxu2 }
  0x8d   :  { %v70_v16 = vmax.f32 %v64_v15, 0.0 }
  0x8e   :  { %v58_v17 = vpop.f32.mrf.mxu0 }
  0x8f   :  { %291 = vmatpush.msk.msra.mxu1 %vm76_vm1, %v70_v16  ;;  %v68_v20 = vmax.f32 %v58_v17, 0.0 }
  0x96   :  { %v61_v18 = vpop.f32.mrf.mxu0 }
  0x97   :  { %v69_v19 = vmax.f32 %v61_v18, 0.0 }
  0x99   :  { %93 = vmatpush.msra.mxu1 %v69_v19 }
  0x9b   :  { %94 = vmatpush.msra.mxu1 %v68_v20 }
  0x9d   :  { %95 = vmatpush.msra.mxu1 %v67_v21 }
  0x9e   :  { %292 = vmatmul.msk.f32.vlgmr.msra.gmra.mxu1 %vm72_vm2, %v71_v22 }
  0x9f   :  { %179 = vmatpush.msrb.mxu1 %v161_v27 }
  0xa1   :  { %180 = vmatpush.msrb.mxu1 %v160_v28 }
  0xa3   :  { %181 = vmatpush.msrb.mxu1 %v159_v29 }
  0xa5   :  { %182 = vmatpush.msrb.mxu1 %v158_v30 }
 0x11b   :  { %v97_v25 = vpop.f32.mrf.mxu1 }
 0x11c   :  { %293 = vmatmul.msk.f32.vlgmr.msrb.gmra.mxu2 %vm25_vm0, %v97_v25  ;;  %294 = vmatmul.msk.f32.vlgmr.msra.gmra.mxu3 %vm25_vm0, %v97_v25 }
 0x19f   :  { %v124_v31 = vpop.f32.mrf.mxu2  ;;  %v149_v32 = vpop.f32.mrf.mxu3 }
 0x1a0   :  { %v127_v33 = vmax.f32 %v124_v31, 0.0  ;;  %v152_v34 = vmax.f32 %v149_v32, 0.0 }
 0x1a2   :  { %v154_v35 = vmul.f32 1.442695, %v152_v34  ;;  %272 = vrot.lane.b32.xlu0 %v152_v34, %s315_s5  ;;  %270 = vst.msk [vmem:[%s468_s4] sm:$0xff] %vm25_vm0, %v127_v33  ;;  %s316_s5 = smov 64  }
 0x1a4   :  { %310 = vpow2.f32 %v154_v35 }
 0x1aa   :  { %v311_v37 = vpop.eup %310 }
 0x1ab   :  { %v156_v38 = vmul.f32 %v311_v37, %v153_v36 }
 0x1ad   :  { %v157_v39 = vadd.f32 %v156_v38, %v127_v33 }
 0x1af   :  { %295 = vmatmul.msk.f32.vlgmr.msrb.gmra.mxu1 %vm25_vm0, %v157_v39 }
 0x214   :  { %v273_v48 = vpop.permute.xlu0 %272 }
 0x215   :  { %276 = vst.msk [vmem:[%s468_s4] sm:$0xff] %vm275_vm3, %v273_v48 }
 0x22c   :  { %v184_v50 = vpop.f32.mrf.mxu1 }
 0x22d   :  { %v185_v51 = vadd.f32 %v307_v49, %v184_v50 }
 0x22f   :  { %312 = vtanh.f32 %v185_v51 }
 0x235   :  { %v313_v52 = vpop.eup %312 }
 0x236   :  { %296 = vmatmul.msk.f32.vlgmr.msra.gmra.mxu2 %vm25_vm0, %v313_v52  ;;  %297 = vmatmul.msk.f32.vlgmr.msrb.gmra.mxu3 %vm25_vm0, %v313_v52 }
 0x2b9   :  { %v214_v54 = vpop.f32.mrf.mxu2  ;;  %v240_v57 = vpop.f32.mrf.mxu3 }
 0x2ba   :  { %v215_v56 = vadd.f32 %v308_v53, %v214_v54  ;;  %v241_v58 = vadd.f32 %v309_v55, %v240_v57 }
 0x2bc   :  { %298 = vmatpush.xpose.msk.msra.mxu1 %vm25_vm0, %v215_v56 }
 0x2bf   :  { %299 = vmatmul.msk.f32.vlgmr.msra.gmra.mxu1 %vm25_vm0, %v241_v58 }
 0x33c   :  { %v266_v59 = vpop.f32.mrf.mxu1 }
 0x33d   :  { %278 = vrot.lane.b32.xlu0 %v266_v59, %s316_s5 }
 0x3af   :  { %v279_v60 = vpop.permute.xlu0 %278 }
 0x3b0   :  { %282 = vst.msk [vmem:[%s468_s4] sm:$0xff] %vm281_vm4, %v279_v60 }

</bundles_post_ra>
